<compile_context>
chip_gen: v5e
topology: v5e:2x2
jax: 0.10.0
libtpu: 0.0.40
codegen_flags: <defaults>
</compile_context>

<pallas_src>
import jax
import jax.numpy as jnp
from jax.experimental import pallas as pl
from jax.experimental.pallas import tpu as pltpu

BATCH = 100          # forward() hard-codes view(batch_size, -1) with batch_size = 100
IN_FEATS = 784       # 1 * 28 * 28
HIDDEN = 20
HIDDEN_PAD = 32      # padded hidden dim: clean (16,128) bf16 MXU tiles


def autoencoder_kernel(x_ref, we_ref, be_ref, wd_ref, bd_ref, y_ref):
    # Encoder: (B, 784)bf16 @ (784, 32)bf16 -> f32 acc, bias add in f32.
    x = x_ref[...].astype(jnp.bfloat16)
    h = jnp.dot(x, we_ref[...], preferred_element_type=jnp.float32) + be_ref[...]
    # Decoder: (B, 32)bf16 @ (32, 784)bf16 -> f32 acc, bias add in f32.
    y = jnp.dot(h.astype(jnp.bfloat16), wd_ref[...],
                preferred_element_type=jnp.float32) + bd_ref[...]
    y_ref[...] = y.astype(y_ref.dtype)   # (B, 784) f32 store, no padding


def prepare_params(w_enc, b_enc, w_dec, b_dec):
    """One-time prep from PyTorch-layout params:
       w_enc (20, 784), b_enc (20,), w_dec (784, 20), b_dec (784,).
       Transpose to (in, out), cast weights to bf16, pad hidden dim 20 -> 32."""
    hp = HIDDEN_PAD - HIDDEN
    we_t = jnp.pad(w_enc.T.astype(jnp.bfloat16), ((0, 0), (0, hp)))        # (784, 32)
    be2 = jnp.pad(b_enc.astype(jnp.float32), (0, hp)).reshape(1, HIDDEN_PAD)  # (1, 32)
    wd_t = jnp.pad(w_dec.T.astype(jnp.bfloat16), ((0, hp), (0, 0)))        # (32, 784)
    bd2 = b_dec.astype(jnp.float32).reshape(1, IN_FEATS)                   # (1, 784)
    return we_t, be2, wd_t, bd2


def autoencoder_forward(x_nchw, params):
    """x_nchw: (BATCH, 1, 28, 28) float32; params from prepare_params()."""
    we_t, be2, wd_t, bd2 = params
    b = x_nchw.shape[0]
    x2d = x_nchw.reshape(b, -1)                     # == x.view(batch_size, -1), no copy

    flops = 2 * b * IN_FEATS * HIDDEN_PAD + 2 * b * HIDDEN_PAD * IN_FEATS
    bytes_accessed = (x2d.size * 4 + we_t.size * 2 + be2.size * 4
                      + wd_t.size * 2 + bd2.size * 4 + b * IN_FEATS * 4)

    y = pl.pallas_call(
        autoencoder_kernel,
        out_shape=jax.ShapeDtypeStruct((b, IN_FEATS), jnp.float32),
        in_specs=[
            pl.BlockSpec(memory_space=pltpu.MemorySpace.VMEM),  # x      (100, 784) f32
            pl.BlockSpec(memory_space=pltpu.MemorySpace.VMEM),  # We^T   (784, 32)  bf16
            pl.BlockSpec(memory_space=pltpu.MemorySpace.VMEM),  # be     (1, 32)    f32
            pl.BlockSpec(memory_space=pltpu.MemorySpace.VMEM),  # Wd^T   (32, 784)  bf16
            pl.BlockSpec(memory_space=pltpu.MemorySpace.VMEM),  # bd     (1, 784)   f32
        ],
        out_specs=pl.BlockSpec(memory_space=pltpu.MemorySpace.VMEM),
        cost_estimate=pl.CostEstimate(flops=flops, transcendentals=0,
                                      bytes_accessed=bytes_accessed),
    )(x2d, we_t, be2, wd_t, bd2)

    # Contiguous reshape only, == .view(batch_size, 1, 28, 28); no slice copy.
    return y.reshape(b, 1, 28, 28)


def init_params(key):
    """Deterministic init mimicking nn.Linear's U(-1/sqrt(fan_in), 1/sqrt(fan_in)),
       in PyTorch layout."""
    k1, k2, k3, k4 = jax.random.split(key, 4)
    bound_e = 1.0 / jnp.sqrt(jnp.float32(IN_FEATS))
    bound_d = 1.0 / jnp.sqrt(jnp.float32(HIDDEN))
    w_enc = jax.random.uniform(k1, (HIDDEN, IN_FEATS), jnp.float32, -bound_e, bound_e)
    b_enc = jax.random.uniform(k2, (HIDDEN,), jnp.float32, -bound_e, bound_e)
    w_dec = jax.random.uniform(k3, (IN_FEATS, HIDDEN), jnp.float32, -bound_d, bound_d)
    b_dec = jax.random.uniform(k4, (IN_FEATS,), jnp.float32, -bound_d, bound_d)
    return w_enc, b_enc, w_dec, b_dec


if __name__ == "__main__":
    key = jax.random.PRNGKey(0)
    kx, kp = jax.random.split(key)
    x = jax.random.normal(kx, (BATCH, 1, 28, 28), jnp.float32)
    w_enc, b_enc, w_dec, b_dec = init_params(kp)

    params = prepare_params(w_enc, b_enc, w_dec, b_dec)   # one-time: transpose/cast/pad
    fwd = jax.jit(autoencoder_forward)

    y = fwd(x, params)
    y = jax.block_until_ready(y)

    # Reference check in plain f32 JAX (same math as the PyTorch module).
    h_ref = x.reshape(BATCH, -1) @ w_enc.T + b_enc
    y_ref = (h_ref @ w_dec.T + b_dec).reshape(BATCH, 1, 28, 28)
    assert y.shape == (BATCH, 1, 28, 28)
    # bf16 MXU operands with f32 accumulation -> loosened tolerance vs f32 reference.
    assert jnp.allclose(y, y_ref, atol=5e-2, rtol=5e-2), \
        float(jnp.max(jnp.abs(y - y_ref)))

    print("KERNEL_OK")
</pallas_src>

<mosaic_0001>
module attributes {stable_mosaic.version = 11 : i64} {
  func.func @autoencoder_kernel(%arg0: memref<100x784xf32, #tpu.memory_space<vmem>>, %arg1: memref<784x32xbf16, #tpu.memory_space<vmem>>, %arg2: memref<1x32xf32, #tpu.memory_space<vmem>>, %arg3: memref<32x784xbf16, #tpu.memory_space<vmem>>, %arg4: memref<1x784xf32, #tpu.memory_space<vmem>>, %arg5: memref<100x784xf32, #tpu.memory_space<vmem>>) attributes {dimension_semantics = [], scalar_prefetch = 0 : i64, scratch_operands = 0 : i64, tpu.core_type = #tpu.core_type<tc>} {
    %c0 = arith.constant 0 : index
    %c0_0 = arith.constant 0 : index
    %0 = vector.load %arg0[%c0, %c0_0] : memref<100x784xf32, #tpu.memory_space<vmem>>, vector<100x784xf32>
    %1 = arith.truncf %0 : vector<100x784xf32> to vector<100x784xbf16>
    %c0_1 = arith.constant 0 : index
    %c0_2 = arith.constant 0 : index
    %2 = vector.load %arg1[%c0_1, %c0_2] : memref<784x32xbf16, #tpu.memory_space<vmem>>, vector<784x32xbf16>
    %cst = arith.constant dense<0.000000e+00> : vector<100x32xf32>
    %3 = tpu.matmul %1, %2, %cst {dimension_numbers = #tpu.dot_dimension_numbers<[1], [0], [0], [1], [0, 0, 1, 1], [], []>} : vector<100x784xbf16>, vector<784x32xbf16>, vector<100x32xf32> -> vector<100x32xf32>
    %c0_3 = arith.constant 0 : index
    %c0_4 = arith.constant 0 : index
    %4 = vector.load %arg2[%c0_3, %c0_4] : memref<1x32xf32, #tpu.memory_space<vmem>>, vector<1x32xf32>
    %5 = vector.broadcast %4 : vector<1x32xf32> to vector<100x32xf32>
    %6 = arith.addf %3, %5 : vector<100x32xf32>
    %7 = arith.truncf %6 : vector<100x32xf32> to vector<100x32xbf16>
    %c0_5 = arith.constant 0 : index
    %c0_6 = arith.constant 0 : index
    %8 = vector.load %arg3[%c0_5, %c0_6] : memref<32x784xbf16, #tpu.memory_space<vmem>>, vector<32x784xbf16>
    %cst_7 = arith.constant dense<0.000000e+00> : vector<100x784xf32>
    %9 = tpu.matmul %7, %8, %cst_7 {dimension_numbers = #tpu.dot_dimension_numbers<[1], [0], [0], [1], [0, 0, 1, 1], [], []>} : vector<100x32xbf16>, vector<32x784xbf16>, vector<100x784xf32> -> vector<100x784xf32>
    %c0_8 = arith.constant 0 : index
    %c0_9 = arith.constant 0 : index
    %10 = vector.load %arg4[%c0_8, %c0_9] : memref<1x784xf32, #tpu.memory_space<vmem>>, vector<1x784xf32>
    %11 = vector.broadcast %10 : vector<1x784xf32> to vector<100x784xf32>
    %12 = arith.addf %9, %11 : vector<100x784xf32>
    %c0_10 = arith.constant 0 : index
    %c0_11 = arith.constant 0 : index
    %13 = vector.load %arg5[%c0_10, %c0_11] : memref<100x784xf32, #tpu.memory_space<vmem>>, vector<100x784xf32>
    tpu.vector_store %arg5[%c0_10, %c0_11], %12 {strides = array<i32>} : memref<100x784xf32, #tpu.memory_space<vmem>>, vector<100x784xf32>,
    return
  }
}

</mosaic_0001>

<bundles_post_ra>
// kernel: autoencoder_forward.1
= control target key start
LH: loop header
LB: loop body
LE: loop exit
PB: predicated region body
PF: predicated region fallthrough
CT: control target
= control target key end

     0   :  { %vm557_vm0 = vcmask 130048   ;;  %vm991_vm1 = vcmask 261120   ;;  %vm1404_vm2 = vcmask 125952   ;;  %s3021_s1 = inlined_call_operand.vmem [shape: bf16[784,32], index: 1, kind: input, shape index: {}]   ;;  %s3022_s2 = inlined_call_operand.vmem [shape: f32[1,32], index: 2, kind: input, shape index: {}]   ;;  %s3023_s0 = inlined_call_operand.vmem [shape: f32[100,784], index: 0, kind: input, shape index: {}]   ;;  %s3024_s3 = inlined_call_operand.vmem [shape: bf16[32,784], index: 3, kind: input, shape index: {}]   ;;  %s3025_s4 = inlined_call_operand.vmem [shape: f32[1,784], index: 4, kind: input, shape index: {}]   ;;  %s3026_s5 = inlined_call_operand.vmem [shape: f32[100,784], index: 5, kind: output, shape index: {}]  }
   0x1   :  { %v1725_v0 = vld [vmem:[%s3021_s1 + $0x38] sm:$0xff]  ;;  %v1724_v2 = vld [vmem:[%s3021_s1 + $0x30] sm:$0xff]  ;;  %v1723_v4 = vld [vmem:[%s3021_s1 + $0x28] sm:$0xff] }
   0x2   :  { %v1733_v1 = vld [vmem:[%s3021_s1 + $0x78] sm:$0xff]  ;;  %579 = vmatpush.bf16.msra.mxu0 %v1725_v0  ;;  %1781 = vmatpush.bf16.msra.mxu2 %v1725_v0  ;;  %v1732_v3 = vld [vmem:[%s3021_s1 + $0x70] sm:$0xff]  ;;  %v1731_v5 = vld [vmem:[%s3021_s1 + $0x68] sm:$0xff] }
   0x3   :  { %622 = vmatpush.bf16.msra.mxu1 %v1733_v1  ;;  %1789 = vmatpush.bf16.msra.mxu3 %v1733_v1  ;;  %v1722_v6 = vld [vmem:[%s3021_s1 + $0x20] sm:$0xff]  ;;  %v1721_v8 = vld [vmem:[%s3021_s1 + $0x18] sm:$0xff]  ;;  %v1720_v10 = vld [vmem:[%s3021_s1 + $0x10] sm:$0xff] }
   0x4   :  { %v1730_v7 = vld [vmem:[%s3021_s1 + $0x60] sm:$0xff]  ;;  %v1729_v9 = vld [vmem:[%s3021_s1 + $0x58] sm:$0xff]  ;;  %v1728_v11 = vld [vmem:[%s3021_s1 + $0x50] sm:$0xff] }
   0x5   :  { %v1719_v12 = vld [vmem:[%s3021_s1 + $0x8] sm:$0xff]  ;;  %v1718_v14 = vld [vmem:[%s3021_s1] sm:$0xff]  ;;  %v28_v17 = vld [vmem:[%s3023_s0 + $0x38] sm:$0xff] }
   0x6   :  { %580 = vmatpush.bf16.msra.mxu0 %v1724_v2  ;;  %1782 = vmatpush.bf16.msra.mxu2 %v1724_v2  ;;  %v1727_v13 = vld [vmem:[%s3021_s1 + $0x48] sm:$0xff]  ;;  %v1726_v15 = vld [vmem:[%s3021_s1 + $0x40] sm:$0xff]  ;;  %v84_v19 = vld [vmem:[%s3023_s0 + $0x1f8] sm:$0xff] }
   0x7   :  { %623 = vmatpush.bf16.msra.mxu1 %v1732_v3  ;;  %1790 = vmatpush.bf16.msra.mxu3 %v1732_v3  ;;  %v21_v16 = vld [vmem:[%s3023_s0] sm:$0xff]  ;;  %v22_v20 = vld [vmem:[%s3023_s0 + $0x8] sm:$0xff]  ;;  %v1741_v24 = vld [vmem:[%s3021_s1 + $0xb8] sm:$0xff] }
   0x8   :  { %v77_v18 = vld [vmem:[%s3023_s0 + $0x1c0] sm:$0xff]  ;;  %v78_v22 = vld [vmem:[%s3023_s0 + $0x1c8] sm:$0xff]  ;;  %v1749_v25 = vld [vmem:[%s3021_s1 + $0xf8] sm:$0xff]  ;;  %v112_v26 = vpack.c.bf16 %v28_v17, %v21_v16 }
   0x9   :  { %v29_v21 = vld [vmem:[%s3023_s0 + $0x40] sm:$0xff]  ;;  %v140_v27 = vpack.c.bf16 %v84_v19, %v77_v18  ;;  %v1740_v30 = vld [vmem:[%s3021_s1 + $0xb0] sm:$0xff]  ;;  %v1757_v32 = vld [vmem:[%s3021_s1 + $0x138] sm:$0xff] }
   0xa   :  { %581 = vmatpush.bf16.msra.mxu0 %v1723_v4  ;;  %1783 = vmatpush.bf16.msra.mxu2 %v1723_v4  ;;  %v85_v23 = vld [vmem:[%s3023_s0 + $0x200] sm:$0xff]  ;;  %v113_v28 = vpack.c.bf16 %v29_v21, %v22_v20  ;;  %v1748_v31 = vld [vmem:[%s3021_s1 + $0xf0] sm:$0xff]  ;;  %v1765_v33 = vld [vmem:[%s3021_s1 + $0x178] sm:$0xff] }
   0xb   :  { %624 = vmatpush.bf16.msra.mxu1 %v1731_v5  ;;  %1791 = vmatpush.bf16.msra.mxu3 %v1731_v5  ;;  %v141_v29 = vpack.c.bf16 %v85_v23, %v78_v22  ;;  %v1756_v34 = vld [vmem:[%s3021_s1 + $0x130] sm:$0xff]  ;;  %v1739_v35 = vld [vmem:[%s3021_s1 + $0xa8] sm:$0xff]  ;;  %v1738_v40 = vld [vmem:[%s3021_s1 + $0xa0] sm:$0xff] }
   0xc   :  { %v1747_v36 = vld [vmem:[%s3021_s1 + $0xe8] sm:$0xff]  ;;  %v1764_v37 = vld [vmem:[%s3021_s1 + $0x170] sm:$0xff]  ;;  %v1746_v41 = vld [vmem:[%s3021_s1 + $0xe0] sm:$0xff] }
   0xd   :  { %v1755_v38 = vld [vmem:[%s3021_s1 + $0x128] sm:$0xff]  ;;  %v35_v39 = vld [vmem:[%s3023_s0 + $0x70] sm:$0xff]  ;;  %v36_v46 = vld [vmem:[%s3023_s0 + $0x78] sm:$0xff] }
   0xe   :  { %582 = vmatpush.bf16.msra.mxu0 %v1722_v6  ;;  %1784 = vmatpush.bf16.msra.mxu2 %v1722_v6  ;;  %v42_v42 = vld [vmem:[%s3023_s0 + $0xa8] sm:$0xff]  ;;  %v91_v43 = vld [vmem:[%s3023_s0 + $0x230] sm:$0xff]  ;;  %v92_v48 = vld [vmem:[%s3023_s0 + $0x238] sm:$0xff] }
   0xf   :  { %625 = vmatpush.bf16.msra.mxu1 %v1730_v7  ;;  %1792 = vmatpush.bf16.msra.mxu3 %v1730_v7  ;;  %v1763_v44 = vld [vmem:[%s3021_s1 + $0x168] sm:$0xff]  ;;  %v43_v47 = vld [vmem:[%s3023_s0 + $0xb0] sm:$0xff]  ;;  %v1754_v50 = vld [vmem:[%s3021_s1 + $0x120] sm:$0xff]  ;;  %v119_v53 = vpack.c.bf16 %v42_v42, %v35_v39 }
  0x10   :  { %v98_v45 = vld [vmem:[%s3023_s0 + $0x268] sm:$0xff]  ;;  %v99_v49 = vld [vmem:[%s3023_s0 + $0x270] sm:$0xff]  ;;  %v1737_v51 = vld [vmem:[%s3021_s1 + $0x98] sm:$0xff]  ;;  %v120_v55 = vpack.c.bf16 %v43_v47, %v36_v46 }
  0x11   :  { %v1745_v52 = vld [vmem:[%s3021_s1 + $0xd8] sm:$0xff]  ;;  %v147_v54 = vpack.c.bf16 %v98_v45, %v91_v43  ;;  %v148_v56 = vpack.c.bf16 %v99_v49, %v92_v48  ;;  %v1762_v57 = vld [vmem:[%s3021_s1 + $0x160] sm:$0xff]  ;;  %v1736_v58 = vld [vmem:[%s3021_s1 + $0x90] sm:$0xff] }
  0x12   :  { %583 = vmatpush.bf16.msra.mxu0 %v1721_v8  ;;  %1785 = vmatpush.bf16.msra.mxu2 %v1721_v8  ;;  %v1744_v59 = vld [vmem:[%s3021_s1 + $0xd0] sm:$0xff]  ;;  %v1753_v60 = vld [vmem:[%s3021_s1 + $0x118] sm:$0xff]  ;;  %v1735_v63 = vld [vmem:[%s3021_s1 + $0x88] sm:$0xff] }
  0x13   :  { %626 = vmatpush.bf16.msra.mxu1 %v1729_v9  ;;  %1793 = vmatpush.bf16.msra.mxu3 %v1729_v9  ;;  %v1761_v61 = vld [vmem:[%s3021_s1 + $0x158] sm:$0xff]  ;;  %v1752_v62 = vld [vmem:[%s3021_s1 + $0x110] sm:$0xff]  ;;  %v1743_v0 = vld [vmem:[%s3021_s1 + $0xc8] sm:$0xff] }
  0x14   :  { %v1760_v1 = vld [vmem:[%s3021_s1 + $0x150] sm:$0xff]  ;;  %v1751_v2 = vld [vmem:[%s3021_s1 + $0x108] sm:$0xff]  ;;  %v1734_v3 = vld [vmem:[%s3021_s1 + $0x80] sm:$0xff] }
  0x15   :  { %v1742_v4 = vld [vmem:[%s3021_s1 + $0xc0] sm:$0xff]  ;;  %v56_v6 = vld [vmem:[%s3023_s0 + $0x118] sm:$0xff]  ;;  %v50_v9 = vld [vmem:[%s3023_s0 + $0xe8] sm:$0xff] }
  0x16   :  { %584 = vmatpush.bf16.msra.mxu0 %v1720_v10  ;;  %1786 = vmatpush.bf16.msra.mxu2 %v1720_v10  ;;  %v49_v5 = vld [vmem:[%s3023_s0 + $0xe0] sm:$0xff]  ;;  %v63_v19 = vld [vmem:[%s3023_s0 + $0x150] sm:$0xff]  ;;  %v70_v20 = vld [vmem:[%s3023_s0 + $0x188] sm:$0xff] }
  0x17   :  { %627 = vmatpush.bf16.msra.mxu1 %v1728_v11  ;;  %1794 = vmatpush.bf16.msra.mxu3 %v1728_v11  ;;  %v1766_v7 = vld [vmem:[%s3021_s1 + $0x180] sm:$0xff]  ;;  %v106_v11 = vld [vmem:[%s3023_s0 + $0x2a8] sm:$0xf]  ;;  %v23_v21 = vld [vmem:[%s3023_s0 + $0x10] sm:$0xff] }
  0x18   :  { %v105_v8 = vld [vmem:[%s3023_s0 + $0x2a0] sm:$0xf]  ;;  %v155_v17 = vpack.c.bf16 %v106_v11, %v106_v11  ;;  %v30_v22 = vld [vmem:[%s3023_s0 + $0x48] sm:$0xff]  ;;  %v64_v23 = vld [vmem:[%s3023_s0 + $0x158] sm:$0xff] }
  0x19   :  { %v57_v10 = vld [vmem:[%s3023_s0 + $0x120] sm:$0xff]  ;;  %v51_v43 = vld [vmem:[%s3023_s0 + $0xf0] sm:$0xff]  ;;  %v46_v46 = vld [vmem:[%s3023_s0 + $0xc8] sm:$0xff] }
  0x1a   :  { %585 = vmatpush.bf16.msra.mxu0 %v1719_v12  ;;  %1787 = vmatpush.bf16.msra.mxu2 %v1719_v12  ;;  %v1759_v12 = vld [vmem:[%s3021_s1 + $0x148] sm:$0xff]  ;;  %v127_v16 = vpack.c.bf16 %v57_v10, %v50_v9  ;;  %v1758_v18 = vld [vmem:[%s3021_s1 + $0x140] sm:$0xff]  ;;  %v39_v45 = vld [vmem:[%s3023_s0 + $0x90] sm:$0xff] }
  0x1b   :  { %628 = vmatpush.bf16.msra.mxu1 %v1727_v13  ;;  %1795 = vmatpush.bf16.msra.mxu3 %v1727_v13  ;;  %v1750_v13 = vld [vmem:[%s3021_s1 + $0x100] sm:$0xff]  ;;  %v52_v47 = vld [vmem:[%s3023_s0 + $0xf8] sm:$0xff]  ;;  %v59_v48 = vld [vmem:[%s3023_s0 + $0x130] sm:$0xff] }
  0x1c   :  { %v40_v49 = vld [vmem:[%s3023_s0 + $0x98] sm:$0xff]  ;;  %v75_v10 = vld [vmem:[%s3023_s0 + $0x1b0] sm:$0xff] }
  0x1d   :  { %v68_v9 = vld [vmem:[%s3023_s0 + $0x178] sm:$0xff] }
  0x1e   :  { %586 = vmatpush.bf16.msra.mxu0 %v1718_v14  ;;  %1788 = vmatpush.bf16.msra.mxu2 %v1718_v14  ;;  %v126_v14 = vpack.c.bf16 %v56_v6, %v49_v5  ;;  %v67_v5 = vld [vmem:[%s3023_s0 + $0x170] sm:$0xff]  ;;  %v74_v6 = vld [vmem:[%s3023_s0 + $0x1a8] sm:$0xff] }
  0x1f   :  { %629 = vmatpush.bf16.msra.mxu1 %v1726_v15  ;;  %1796 = vmatpush.bf16.msra.mxu3 %v1726_v15  ;;  %v154_v15 = vpack.c.bf16 %v105_v8, %v105_v8  ;;  %v87_v8 = vld [vmem:[%s3023_s0 + $0x210] sm:$0xff] }
  0x21   :  { %587 = vmatmul.bf16.vlgmr.msra.gmra.mxu0 %v112_v26  ;;  %607 = vmatmul.bf16.vlgmr.msra.gmra.mxu2 %v140_v27  ;;  %v31_v26 = vld [vmem:[%s3023_s0 + $0x50] sm:$0xff]  ;;  %v133_v27 = vpack.c.bf16 %v70_v20, %v63_v19  ;;  %v94_v19 = vld [vmem:[%s3023_s0 + $0x248] sm:$0xff]  ;;  %v101_v20 = vld [vmem:[%s3023_s0 + $0x280] sm:$0xff] }
  0x22   :  { %665 = vmatpush.bf16.msrb.mxu2 %v1741_v24  ;;  %630 = vmatmul.bf16.vlgmr.msra.gmra.mxu1 %v113_v28  ;;  %v71_v24 = vld [vmem:[%s3023_s0 + $0x190] sm:$0xff]  ;;  %v114_v28 = vpack.c.bf16 %v30_v22, %v23_v21  ;;  %v82_v21 = vld [vmem:[%s3023_s0 + $0x1e8] sm:$0xff]  ;;  %v89_v22 = vld [vmem:[%s3023_s0 + $0x220] sm:$0xff] }
  0x23   :  { %708 = vmatpush.bf16.msrb.mxu3 %v1749_v25  ;;  %751 = vmatpush.bf16.msrb.mxu0 %v1757_v32  ;;  %v24_v25 = vld [vmem:[%s3023_s0 + $0x18] sm:$0xff] }
  0x24   :  { %650 = vmatmul.bf16.vlgmr.msra.gmra.mxu3 %v141_v29  ;;  %794 = vmatpush.bf16.msrb.mxu1 %v1765_v33  ;;  %v134_v29 = vpack.c.bf16 %v71_v24, %v64_v23  ;;  %v44_v32 = vld [vmem:[%s3023_s0 + $0xb8] sm:$0xff]  ;;  %v25_v33 = vld [vmem:[%s3023_s0 + $0x20] sm:$0xff] }
  0x25   :  { %v2188_v23 = vld [vmem:[%s3022_s2] ss:$0 sm:$0xff] }
  0x26   :  { %666 = vmatpush.bf16.msrb.mxu2 %v1740_v30  ;;  %v115_v30 = vpack.c.bf16 %v31_v26, %v24_v25 }
  0x27   :  { %709 = vmatpush.bf16.msrb.mxu3 %v1748_v31  ;;  %752 = vmatpush.bf16.msrb.mxu0 %v1756_v34  ;;  %v37_v31 = vld [vmem:[%s3023_s0 + $0x80] sm:$0xff]  ;;  %v32_v34 = vld [vmem:[%s3023_s0 + $0x58] sm:$0xff] }
  0x28   :  { %795 = vmatpush.bf16.msrb.mxu1 %v1764_v37  ;;  %v26_v37 = vld [vmem:[%s3023_s0 + $0x28] sm:$0xff]  ;;  %v121_v39 = vpack.c.bf16 %v44_v32, %v37_v31 }
  0x2a   :  { %667 = vmatpush.bf16.msrb.mxu2 %v1739_v35  ;;  %v38_v35 = vld [vmem:[%s3023_s0 + $0x88] sm:$0xff] }
  0x2b   :  { %710 = vmatpush.bf16.msrb.mxu3 %v1747_v36  ;;  %753 = vmatpush.bf16.msrb.mxu0 %v1755_v38  ;;  %v45_v36 = vld [vmem:[%s3023_s0 + $0xc0] sm:$0xff] }
  0x2c   :  { %796 = vmatpush.bf16.msrb.mxu1 %v1763_v44  ;;  %v33_v38 = vld [vmem:[%s3023_s0 + $0x60] sm:$0xff]  ;;  %v58_v44 = vld [vmem:[%s3023_s0 + $0x128] sm:$0xff] }
  0x2d   :  { %v117_v42 = vpack.c.bf16 %v33_v38, %v26_v37  ;;  %v107_v38 = vld [vmem:[%s3023_s0 + $0x2b0] sm:$0xf] }
  0x2e   :  { %668 = vmatpush.bf16.msrb.mxu2 %v1738_v40  ;;  %v116_v40 = vpack.c.bf16 %v32_v34, %v25_v33 }
  0x2f   :  { %711 = vmatpush.bf16.msrb.mxu3 %v1746_v41  ;;  %754 = vmatpush.bf16.msrb.mxu0 %v1754_v50  ;;  %v122_v41 = vpack.c.bf16 %v45_v36, %v38_v35  ;;  %v47_v50 = vld [vmem:[%s3023_s0 + $0xd0] sm:$0xff] }
  0x30   :  { %797 = vmatpush.bf16.msrb.mxu1 %v1762_v57  ;;  %v53_v57 = vld [vmem:[%s3023_s0 + $0x100] sm:$0xff] }
  0x31   :  { %592 = vmatmul.bf16.gmra.mxu0 %v119_v53  ;;  %612 = vmatmul.bf16.gmra.mxu2 %v147_v54  ;;  %v129_v53 = vpack.c.bf16 %v59_v48, %v52_v47  ;;  %v124_v54 = vpack.c.bf16 %v47_v50, %v40_v49  ;;  %v156_v47 = vpack.c.bf16 %v107_v38, %v107_v38 }
  0x32   :  { %669 = vmatpush.bf16.msrb.mxu2 %v1737_v51  ;;  %635 = vmatmul.bf16.gmra.mxu1 %v120_v55  ;;  %v128_v51 = vpack.c.bf16 %v58_v44, %v51_v43  ;;  %v65_v55 = vld [vmem:[%s3023_s0 + $0x160] sm:$0xff]  ;;  %v103_v43 = vld [vmem:[%s3023_s0 + $0x290] sm:$0xff] }
  0x33   :  { %712 = vmatpush.bf16.msrb.mxu3 %v1745_v52  ;;  %755 = vmatpush.bf16.msrb.mxu0 %v1753_v60  ;;  %v123_v52 = vpack.c.bf16 %v46_v46, %v39_v45  ;;  %v73_v60 = vld [vmem:[%s3023_s0 + $0x1a0] sm:$0xff] }
  0x34   :  { %655 = vmatmul.bf16.gmra.mxu3 %v148_v56  ;;  %798 = vmatpush.bf16.msrb.mxu1 %v1761_v61  ;;  %v72_v56 = vld [vmem:[%s3023_s0 + $0x198] sm:$0xff]  ;;  %v54_v61 = vld [vmem:[%s3023_s0 + $0x108] sm:$0xff] }
  0x36   :  { %670 = vmatpush.bf16.msrb.mxu2 %v1736_v58  ;;  %v60_v58 = vld [vmem:[%s3023_s0 + $0x138] sm:$0xff] }
  0x37   :  { %713 = vmatpush.bf16.msrb.mxu3 %v1744_v59  ;;  %756 = vmatpush.bf16.msrb.mxu0 %v1752_v62  ;;  %v66_v59 = vld [vmem:[%s3023_s0 + $0x168] sm:$0xff]  ;;  %v61_v62 = vld [vmem:[%s3023_s0 + $0x140] sm:$0xff] }
  0x38   :  { %799 = vmatpush.bf16.msrb.mxu1 %v1760_v1  ;;  %v136_v1 = vpack.c.bf16 %v73_v60, %v66_v59 }
  0x3a   :  { %671 = vmatpush.bf16.msrb.mxu2 %v1735_v63  ;;  %v135_v63 = vpack.c.bf16 %v72_v56, %v65_v55 }
  0x3b   :  { %714 = vmatpush.bf16.msrb.mxu3 %v1743_v0  ;;  %757 = vmatpush.bf16.msrb.mxu0 %v1751_v2  ;;  %v130_v0 = vpack.c.bf16 %v60_v58, %v53_v57  ;;  %v131_v2 = vpack.c.bf16 %v61_v62, %v54_v61  ;;  %v109_v61 = vld [vmem:[%s3023_s0 + $0x2c0] sm:$0xf]  ;;  %v27_v62 = vld [vmem:[%s3023_s0 + $0x30] sm:$0xff] }
  0x3c   :  { %800 = vmatpush.bf16.msrb.mxu1 %v1759_v12  ;;  %v137_v12 = vpack.c.bf16 %v74_v6, %v67_v5 }
  0x3e   :  { %672 = vmatpush.bf16.msrb.mxu2 %v1734_v3  ;;  %v79_v3 = vld [vmem:[%s3023_s0 + $0x1d0] sm:$0xff] }
  0x3f   :  { %715 = vmatpush.bf16.msrb.mxu3 %v1742_v4  ;;  %758 = vmatpush.bf16.msrb.mxu0 %v1750_v13  ;;  %v86_v4 = vld [vmem:[%s3023_s0 + $0x208] sm:$0xff] }
  0x40   :  { %801 = vmatpush.bf16.msrb.mxu1 %v1758_v18  ;;  %v142_v11 = vpack.c.bf16 %v86_v4, %v79_v3  ;;  %v88_v18 = vld [vmem:[%s3023_s0 + $0x218] sm:$0xff]  ;;  %v158_v4 = vpack.c.bf16 %v109_v61, %v109_v61 }
  0x41   :  { %597 = vmatmul.bf16.gmra.mxu0 %v126_v14  ;;  %617 = vmatmul.bf16.gmra.mxu2 %v154_v15  ;;  %v138_v14 = vpack.c.bf16 %v75_v10, %v68_v9  ;;  %v93_v15 = vld [vmem:[%s3023_s0 + $0x240] sm:$0xff] }
  0x42   :  { %844 = vmatpush.bf16.msra.mxu2 %v1766_v7  ;;  %640 = vmatmul.bf16.gmra.mxu1 %v127_v16  ;;  %v80_v7 = vld [vmem:[%s3023_s0 + $0x1d8] sm:$0xff] }
  0x43   :  { %v143_v13 = vpack.c.bf16 %v87_v8, %v80_v7  ;;  %v100_v16 = vld [vmem:[%s3023_s0 + $0x278] sm:$0xff] }
  0x44   :  { %660 = vmatmul.bf16.gmra.mxu3 %v155_v17  ;;  %v81_v17 = vld [vmem:[%s3023_s0 + $0x1e0] sm:$0xff]  ;;  %v149_v24 = vpack.c.bf16 %v100_v16, %v93_v15 }
  0x45   :  { %v144_v25 = vpack.c.bf16 %v88_v18, %v81_v17 }
  0x51   :  { %602 = vmatmul.bf16.gmra.mxu0 %v133_v27  ;;  %673 = vmatmul.bf16.vlgmr.msrb.gmra.mxu2 %v114_v28  ;;  %v150_v27 = vpack.c.bf16 %v101_v20, %v94_v19  ;;  %v145_v28 = vpack.c.bf16 %v89_v22, %v82_v21  ;;  %v1774_v20 = vld [vmem:[%s3024_s3 + $0x3c] sm:$0xf]  ;;  %v1645_v21 = vld [vmem:[%s3024_s3 + $0x54] sm:$0xf0]  ;;  %v1651_v22 = vld [vmem:[%s3024_s3 + $0x40] sm:$0xf] }
  0x52   :  { %645 = vmatmul.bf16.gmra.mxu1 %v134_v29 }
  0x54   :  { %716 = vmatmul.bf16.vlgmr.msrb.gmra.mxu3 %v115_v30 }
  0x61   :  { %678 = vmatmul.bf16.gmra.mxu2 %v121_v39  ;;  %759 = vmatmul.bf16.vlgmr.msrb.gmra.mxu0 %v116_v40  ;;  %v95_v39 = vld [vmem:[%s3023_s0 + $0x250] sm:$0xff]  ;;  %v102_v40 = vld [vmem:[%s3023_s0 + $0x288] sm:$0xff] }
  0x62   :  { %802 = vmatmul.bf16.vlgmr.msrb.gmra.mxu1 %v117_v42  ;;  %v96_v42 = vld [vmem:[%s3023_s0 + $0x258] sm:$0xff]  ;;  %v151_v48 = vpack.c.bf16 %v102_v40, %v95_v39 }
  0x64   :  { %721 = vmatmul.bf16.gmra.mxu3 %v122_v41  ;;  %v108_v41 = vld [vmem:[%s3023_s0 + $0x2b8] sm:$0xf] }
  0x65   :  { %v157_v50 = vpack.c.bf16 %v108_v41, %v108_v41 }
  0x71   :  { %683 = vmatmul.bf16.gmra.mxu2 %v128_v51  ;;  %764 = vmatmul.bf16.gmra.mxu0 %v123_v52  ;;  %v152_v51 = vpack.c.bf16 %v103_v43, %v96_v42 }
  0x72   :  { %807 = vmatmul.bf16.gmra.mxu1 %v124_v54 }
  0x74   :  { %726 = vmatmul.bf16.gmra.mxu3 %v129_v53 }
  0x81   :  { %688 = vmatmul.bf16.gmra.mxu2 %v135_v63  ;;  %769 = vmatmul.bf16.gmra.mxu0 %v130_v0  ;;  %v34_v63 = vld [vmem:[%s3023_s0 + $0x68] sm:$0xff] }
  0x82   :  { %812 = vmatmul.bf16.gmra.mxu1 %v131_v2  ;;  %v110_v0 = vld [vmem:[%s3023_s0 + $0x2c8] sm:$0xf]  ;;  %v118_v5 = vpack.c.bf16 %v34_v63, %v27_v62 }
  0x83   :  { %v159_v7 = vpack.c.bf16 %v110_v0, %v110_v0 }
  0x84   :  { %731 = vmatmul.bf16.gmra.mxu3 %v136_v1 }
  0x91   :  { %693 = vmatmul.bf16.gmra.mxu2 %v142_v11  ;;  %774 = vmatmul.bf16.gmra.mxu0 %v137_v12  ;;  %v1643_v11 = vld [vmem:[%s3024_s3 + $0x38] sm:$0xf]  ;;  %v1777_v12 = vld [vmem:[%s3024_s3 + $0x50] sm:$0xf0] }
  0x92   :  { %817 = vmatmul.bf16.gmra.mxu1 %v138_v14 }
  0x94   :  { %736 = vmatmul.bf16.gmra.mxu3 %v143_v13  ;;  %v1644_v13 = vor.u32 %v1777_v12, %v1643_v11 }
  0x96   :  { %1019 = vmatpush.bf16.msra.mxu3 %v1644_v13 }
  0x9e   :  { %v588_v26 = vpop.f32.mrf.mxu0 }
  0x9f   :  { %v589_v29 = vadd.f32 %v2188_v23, %v588_v26  ;;  %v631_v30 = vpop.f32.mrf.mxu1 }
  0xa1   :  { %v2191_v31 = vadd.f32 %v631_v30, %v589_v29  ;;  %698 = vmatmul.bf16.gmra.mxu2 %v149_v24  ;;  %779 = vmatmul.bf16.gmra.mxu0 %v144_v25  ;;  %v1648_v24 = vor.u32 %v1774_v20, %v1645_v21  ;;  %v1778_v25 = vld [vmem:[%s3024_s3 + $0x58] sm:$0xf0] }
  0xa2   :  { %822 = vmatmul.bf16.gmra.mxu1 %v145_v28  ;;  %v1652_v26 = vor.u32 %v1778_v25, %v1651_v22  ;;  %v48_v28 = vld [vmem:[%s3023_s0 + $0xd8] sm:$0xff]  ;;  %v1615_v22 = vld [vmem:[%s3024_s3] sm:$0xf]  ;;  %v83_v25 = vld [vmem:[%s3023_s0 + $0x1f0] sm:$0xff] }
  0xa3   :  { %1062 = vmatpush.bf16.msra.mxu0 %v1648_v24  ;;  %v1770_v24 = vld [vmem:[%s3024_s3 + $0x18] sm:$0xf0] }
  0xa4   :  { %741 = vmatmul.bf16.gmra.mxu3 %v150_v27  ;;  %v608_v32 = vpop.f32.mrf.mxu2  ;;  %v41_v27 = vld [vmem:[%s3023_s0 + $0xa0] sm:$0xff]  ;;  %1105 = vmatpush.bf16.msra.mxu1 %v1652_v26  ;;  %v1616_v26 = vor.u32 %v1770_v24, %v1615_v22  ;;  %v111_v24 = vld [vmem:[%s3023_s0 + $0x2d0] sm:$0xf] }
  0xa5   :  { %v609_v33 = vadd.f32 %v2188_v23, %v608_v32  ;;  %v125_v32 = vpack.c.bf16 %v48_v28, %v41_v27 }
  0xa6   :  { %v2194_v35 = vpop.f32.mrf.mxu0  ;;  %1020 = vmatpush.bf16.msra.mxu3 %v1616_v26  ;;  %v160_v26 = vpack.c.bf16 %v111_v24, %v111_v24 }
  0xa7   :  { %v651_v34 = vpop.f32.mrf.mxu3  ;;  %v2198_v37 = vpop.f32.mrf.mxu1 }
  0xa8   :  { %v2196_v36 = vadd.f32 %v651_v34, %v609_v33 }
  0xac   :  { %v610_v44 = vpop.f32.mrf.mxu2 }
  0xad   :  { %v2219_v45 = vadd.f32 %v2188_v23, %v610_v44 }
  0xae   :  { %v593_v49 = vpop.f32.mrf.mxu0 }
  0xaf   :  { %v2221_v46 = vpop.f32.mrf.mxu3  ;;  %v594_v52 = vadd.f32 %v2188_v23, %v593_v49  ;;  %v636_v53 = vpop.f32.mrf.mxu1  ;;  %v62_v49 = vld [vmem:[%s3023_s0 + $0x148] sm:$0xff] }
  0xb1   :  { %v2224_v54 = vadd.f32 %v636_v53, %v594_v52  ;;  %703 = vmatmul.bf16.gmra.mxu2 %v156_v47  ;;  %784 = vmatmul.bf16.gmra.mxu0 %v151_v48  ;;  %v55_v48 = vld [vmem:[%s3023_s0 + $0x110] sm:$0xff] }
  0xb2   :  { %827 = vmatmul.bf16.gmra.mxu1 %v152_v51  ;;  %v132_v52 = vpack.c.bf16 %v62_v49, %v55_v48 }
  0xb4   :  { %746 = vmatmul.bf16.gmra.mxu3 %v157_v50  ;;  %v613_v55 = vpop.f32.mrf.mxu2 }
  0xb5   :  { %v614_v56 = vadd.f32 %v2188_v23, %v613_v55 }
  0xb6   :  { %v2227_v58 = vpop.f32.mrf.mxu0 }
  0xb7   :  { %v656_v57 = vpop.f32.mrf.mxu3  ;;  %v2231_v60 = vpop.f32.mrf.mxu1 }
  0xb8   :  { %v2229_v59 = vadd.f32 %v656_v57, %v614_v56 }
  0xbc   :  { %v615_v1 = vpop.f32.mrf.mxu2 }
  0xbd   :  { %v2246_v2 = vadd.f32 %v2188_v23, %v615_v1 }
  0xbe   :  { %v598_v6 = vpop.f32.mrf.mxu0 }
  0xbf   :  { %v2248_v3 = vpop.f32.mrf.mxu3  ;;  %v599_v8 = vadd.f32 %v2188_v23, %v598_v6  ;;  %v641_v9 = vpop.f32.mrf.mxu1 }
  0xc1   :  { %v2251_v10 = vadd.f32 %v641_v9, %v599_v8  ;;  %789 = vmatmul.bf16.gmra.mxu0 %v158_v4  ;;  %1606 = vmatmul.msk.bf16.vlgmr.msra.gmra.mxu2 %vm557_vm0, %v118_v5  ;;  %v69_v4 = vld [vmem:[%s3023_s0 + $0x180] sm:$0xff]  ;;  %v76_v5 = vld [vmem:[%s3023_s0 + $0x1b8] sm:$0xff] }
  0xc2   :  { %832 = vmatmul.bf16.gmra.mxu1 %v159_v7  ;;  %v139_v8 = vpack.c.bf16 %v76_v5, %v69_v4 }
  0xc4   :  { %v618_v14 = vpop.f32.mrf.mxu2 }
  0xc5   :  { %v619_v15 = vadd.f32 %v2188_v23, %v618_v14 }
  0xc6   :  { %v2261_v17 = vpop.f32.mrf.mxu0 }
  0xc7   :  { %v661_v16 = vpop.f32.mrf.mxu3  ;;  %v2265_v19 = vpop.f32.mrf.mxu1 }
  0xc8   :  { %v2263_v18 = vadd.f32 %v661_v16, %v619_v15 }
  0xcc   :  { %v620_v29 = vpop.f32.mrf.mxu2 }
  0xce   :  { %v603_v33 = vpop.f32.mrf.mxu0 }
  0xcf   :  { %v663_v30 = vpop.f32.mrf.mxu3  ;;  %v604_v34 = vadd.f32 %v2188_v23, %v603_v33  ;;  %v646_v38 = vpop.f32.mrf.mxu1 }
  0xd1   :  { %v2286_v39 = vadd.f32 %v646_v38, %v604_v34  ;;  %1607 = vmatmul.msk.bf16.gmra.mxu2 %vm557_vm0, %v125_v32  ;;  %v1767_v34 = vld [vmem:[%s3024_s3 + $0x4] sm:$0xf]  ;;  %v1617_v38 = vld [vmem:[%s3024_s3 + $0x1c] sm:$0xf0] }
  0xd4   :  { %v674_v40 = vpop.f32.mrf.mxu2 }
  0xd5   :  { %v675_v41 = vadd.f32 %v674_v40, %v2191_v31  ;;  %v1623_v40 = vld [vmem:[%s3024_s3 + $0x8] sm:$0xf] }
  0xd6   :  { %v2290_v43 = vpop.f32.mrf.mxu0 }
  0xd7   :  { %v717_v42 = vpop.f32.mrf.mxu3  ;;  %v2292_v47 = vpop.f32.mrf.mxu1 }
  0xd8   :  { %v718_v44 = vadd.f32 %v717_v42, %v675_v41  ;;  %v1620_v41 = vor.u32 %v1767_v34, %v1617_v38  ;;  %v1771_v42 = vld [vmem:[%s3024_s3 + $0x20] sm:$0xf0] }
  0xd9   :  { %v1624_v48 = vor.u32 %v1771_v42, %v1623_v40  ;;  %v1775_v40 = vld [vmem:[%s3024_s3 + $0x44] sm:$0xf] }
  0xda   :  { %1063 = vmatpush.bf16.msra.mxu0 %v1620_v41  ;;  %v1653_v41 = vld [vmem:[%s3024_s3 + $0x5c] sm:$0xf0] }
  0xdb   :  { %1106 = vmatpush.bf16.msra.mxu1 %v1624_v48  ;;  %v1656_v48 = vor.u32 %v1775_v40, %v1653_v41 }
  0xdc   :  { %v2300_v50 = vpop.f32.mrf.mxu2 }
  0xdd   :  { %1148 = vmatpush.bf16.msrb.mxu2 %v1656_v48  ;;  %v591_v48 = vadd.f32 %v2188_v23, %v2194_v35  ;;  %v596_v35 = vadd.f32 %v2188_v23, %v2227_v58 }
  0xde   :  { %v760_v31 = vpop.f32.mrf.mxu0 }
  0xdf   :  { %v2302_v51 = vpop.f32.mrf.mxu3  ;;  %v761_v53 = vadd.f32 %v760_v31, %v718_v44  ;;  %v803_v55 = vpop.f32.mrf.mxu1 }
  0xe1   :  { %v2304_v56 = vadd.f32 %v803_v55, %v761_v53  ;;  %1608 = vmatmul.msk.bf16.gmra.mxu2 %vm557_vm0, %v132_v52 }
  0xe4   :  { %v679_v57 = vpop.f32.mrf.mxu2 }
  0xe5   :  { %v680_v61 = vadd.f32 %v679_v57, %v2224_v54 }
  0xe6   :  { %v2308_v63 = vpop.f32.mrf.mxu0 }
  0xe7   :  { %v722_v62 = vpop.f32.mrf.mxu3  ;;  %v2310_v1 = vpop.f32.mrf.mxu1 }
  0xe8   :  { %v723_v0 = vadd.f32 %v722_v62, %v680_v61  ;;  %v97_v61 = vld [vmem:[%s3023_s0 + $0x260] sm:$0xff]  ;;  %v104_v62 = vld [vmem:[%s3023_s0 + $0x298] sm:$0xff] }
  0xe9   :  { %v153_v5 = vpack.c.bf16 %v104_v62, %v97_v61 }
  0xec   :  { %v2318_v6 = vpop.f32.mrf.mxu2 }
  0xee   :  { %v765_v54 = vpop.f32.mrf.mxu0 }
  0xef   :  { %v2320_v7 = vpop.f32.mrf.mxu3  ;;  %v766_v9 = vadd.f32 %v765_v54, %v723_v0  ;;  %v808_v11 = vpop.f32.mrf.mxu1 }
  0xf1   :  { %v2322_v12 = vadd.f32 %v808_v11, %v766_v9  ;;  %1609 = vmatmul.msk.bf16.gmra.mxu2 %vm557_vm0, %v139_v8 }
  0xf4   :  { %v684_v13 = vpop.f32.mrf.mxu2 }
  0xf5   :  { %v685_v14 = vadd.f32 %v684_v13, %v2251_v10  ;;  %v90_v10 = vld [vmem:[%s3023_s0 + $0x228] sm:$0xff] }
  0xf6   :  { %v2326_v16 = vpop.f32.mrf.mxu0  ;;  %v146_v29 = vpack.c.bf16 %v90_v10, %v83_v25 }
  0xf7   :  { %v727_v15 = vpop.f32.mrf.mxu3  ;;  %v2328_v21 = vpop.f32.mrf.mxu1 }
  0xf8   :  { %v728_v20 = vadd.f32 %v727_v15, %v685_v14 }
  0xfc   :  { %v2342_v27 = vpop.f32.mrf.mxu2 }
  0xfe   :  { %v770_v30 = vpop.f32.mrf.mxu0 }
  0xff   :  { %v2344_v28 = vpop.f32.mrf.mxu3  ;;  %v771_v32 = vadd.f32 %v770_v30, %v728_v20  ;;  %v813_v33 = vpop.f32.mrf.mxu1 }
 0x101   :  { %v2358_v44 = vadd.f32 %v813_v33, %v771_v32  ;;  %1610 = vmatmul.msk.bf16.gmra.mxu2 %vm557_vm0, %v146_v29 }
 0x104   :  { %v689_v49 = vpop.f32.mrf.mxu2 }
 0x105   :  { %v690_v52 = vadd.f32 %v689_v49, %v2286_v39 }
 0x106   :  { %v2362_v53 = vpop.f32.mrf.mxu0 }
 0x107   :  { %v732_v31 = vpop.f32.mrf.mxu3  ;;  %v2364_v57 = vpop.f32.mrf.mxu1 }
 0x108   :  { %v733_v55 = vadd.f32 %v732_v31, %v690_v52  ;;  %v1625_v31 = vld [vmem:[%s3024_s3 + $0x24] sm:$0xf0] }
 0x10c   :  { %v2372_v0 = vpop.f32.mrf.mxu2 }
 0x10e   :  { %v775_v39 = vpop.f32.mrf.mxu0 }
 0x10f   :  { %v2374_v4 = vpop.f32.mrf.mxu3  ;;  %v776_v8 = vadd.f32 %v775_v39, %v733_v55  ;;  %v818_v54 = vpop.f32.mrf.mxu1 }
 0x111   :  { %v2376_v9 = vadd.f32 %v818_v54, %v776_v8  ;;  %1611 = vmatmul.msk.bf16.gmra.mxu2 %vm557_vm0, %v153_v5 }
 0x114   :  { %v694_v11 = vpop.f32.mrf.mxu2 }
 0x115   :  { %v695_v13 = vadd.f32 %v694_v11, %v2196_v36  ;;  %v1659_v11 = vld [vmem:[%s3024_s3 + $0x48] sm:$0xf] }
 0x116   :  { %v2380_v15 = vpop.f32.mrf.mxu0 }
 0x117   :  { %v737_v14 = vpop.f32.mrf.mxu3  ;;  %v2382_v22 = vpop.f32.mrf.mxu1 }
 0x118   :  { %v738_v20 = vadd.f32 %v737_v14, %v695_v13  ;;  %v1779_v13 = vld [vmem:[%s3024_s3 + $0x60] sm:$0xf0] }
 0x119   :  { %v1660_v14 = vor.u32 %v1779_v13, %v1659_v11 }
 0x11b   :  { %1191 = vmatpush.bf16.msrb.mxu3 %v1660_v14 }
 0x11c   :  { %v2387_v25 = vpop.f32.mrf.mxu2 }
 0x11e   :  { %v780_v29 = vpop.f32.mrf.mxu0 }
 0x11f   :  { %v2389_v10 = vpop.f32.mrf.mxu3  ;;  %v781_v30 = vadd.f32 %v780_v29, %v738_v20  ;;  %v823_v32 = vpop.f32.mrf.mxu1  ;;  %v1776_v29 = vld [vmem:[%s3024_s3 + $0x4c] sm:$0xf] }
 0x121   :  { %v2391_v33 = vadd.f32 %v823_v32, %v781_v30  ;;  %1612 = vmatmul.msk.bf16.gmra.mxu2 %vm557_vm0, %v160_v26  ;;  %v1661_v30 = vld [vmem:[%s3024_s3 + $0x64] sm:$0xf0]  ;;  %v1667_v32 = vld [vmem:[%s3024_s3 + $0x50] sm:$0xf] }
 0x124   :  { %v699_v36 = vpop.f32.mrf.mxu2 }
 0x125   :  { %v700_v34 = vadd.f32 %v699_v36, %v2229_v59  ;;  %v1768_v59 = vld [vmem:[%s3024_s3 + $0xc] sm:$0xf] }
 0x126   :  { %v2401_v42 = vpop.f32.mrf.mxu0  ;;  %v1628_v61 = vor.u32 %v1768_v59, %v1625_v31  ;;  %v634_v59 = vadd.f32 %v2198_v37, %v591_v48 }
 0x127   :  { %v742_v38 = vpop.f32.mrf.mxu3  ;;  %v2403_v52 = vpop.f32.mrf.mxu1 }
 0x128   :  { %v743_v49 = vadd.f32 %v742_v38, %v700_v34  ;;  %1149 = vmatpush.bf16.msrb.mxu2 %v1628_v61  ;;  %v1664_v34 = vor.u32 %v1776_v29, %v1661_v30  ;;  %v639_v30 = vadd.f32 %v2231_v60, %v596_v35 }
 0x12a   :  { %1234 = vmatpush.bf16.msrb.mxu0 %v1664_v34 }
 0x12c   :  { %v2411_v55 = vpop.f32.mrf.mxu2 }
 0x12e   :  { %v785_v5 = vpop.f32.mrf.mxu0 }
 0x12f   :  { %v2413_v62 = vpop.f32.mrf.mxu3  ;;  %v786_v39 = vadd.f32 %v785_v5, %v743_v49  ;;  %v828_v8 = vpop.f32.mrf.mxu1 }
 0x131   :  { %v2415_v54 = vadd.f32 %v828_v8, %v786_v39  ;;  %v677_v8 = vadd.f32 %v2300_v50, %v634_v59 }
 0x133   :  { %v720_v14 = vadd.f32 %v2302_v51, %v677_v8  ;;  %v682_v51 = vadd.f32 %v2318_v6, %v639_v30  ;;  %v1769_v8 = vld [vmem:[%s3024_s3 + $0x14] sm:$0xf] }
 0x134   :  { %v704_v20 = vpop.f32.mrf.mxu2 }
 0x135   :  { %v705_v24 = vadd.f32 %v704_v20, %v2263_v18  ;;  %v1780_v18 = vld [vmem:[%s3024_s3 + $0x68] sm:$0xf0]  ;;  %v725_v60 = vadd.f32 %v2320_v7, %v682_v51  ;;  %v1631_v7 = vld [vmem:[%s3024_s3 + $0x10] sm:$0xf] }
 0x136   :  { %v2433_v36 = vpop.f32.mrf.mxu0  ;;  %v1668_v41 = vor.u32 %v1780_v18, %v1667_v32 }
 0x137   :  { %v747_v26 = vpop.f32.mrf.mxu3  ;;  %v2438_v40 = vpop.f32.mrf.mxu1 }
 0x138   :  { %v748_v38 = vadd.f32 %v747_v26, %v705_v24  ;;  %1277 = vmatpush.bf16.msrb.mxu1 %v1668_v41  ;;  %v763_v24 = vadd.f32 %v2308_v63, %v720_v14  ;;  %v601_v63 = vadd.f32 %v2188_v23, %v2261_v17 }
 0x13a   :  { %v806_v37 = vadd.f32 %v2310_v1, %v763_v24  ;;  %v644_v18 = vadd.f32 %v2265_v19, %v601_v63 }
 0x13c   :  { %v706_v49 = vpop.f32.mrf.mxu2 }
 0x13d   :  { %v687_v49 = vadd.f32 %v2342_v27, %v644_v18  ;;  %v606_v27 = vadd.f32 %v2188_v23, %v2290_v43  ;;  %v1639_v23 = vld [vmem:[%s3024_s3 + $0x18] sm:$0xf] }
 0x13e   :  { %v790_v61 = vpop.f32.mrf.mxu0 }
 0x13f   :  { %v749_v31 = vpop.f32.mrf.mxu3  ;;  %v791_v5 = vadd.f32 %v790_v61, %v748_v38  ;;  %v833_v39 = vpop.f32.mrf.mxu1  ;;  %v730_v19 = vadd.f32 %v2344_v28, %v687_v49  ;;  %v649_v28 = vadd.f32 %v2292_v47, %v606_v27  ;;  %v1773_v47 = vld [vmem:[%s3024_s3 + $0x30] sm:$0xf0] }
 0x141   :  { %v2444_v11 = vadd.f32 %v833_v39, %v791_v5 }
 0x144   :  { %v846_v13 = vpop.f32.mrf.mxu2 }
 0x145   :  { %v847_v32 = vadd.f32 %v846_v13, %v2304_v56  ;;  %v768_v56 = vadd.f32 %v2326_v16, %v725_v60 }
 0x146   :  { %v792_v20 = vpop.f32.mrf.mxu0 }
 0x147   :  { %v835_v26 = vpop.f32.mrf.mxu1  ;;  %v811_v1 = vadd.f32 %v2328_v21, %v768_v56  ;;  %v773_v21 = vadd.f32 %v2362_v53, %v730_v19  ;;  %v1633_v53 = vld [vmem:[%s3024_s3 + $0x2c] sm:$0xf0] }
 0x148   :  { %v1636_v43 = vor.u32 %v1769_v8, %v1633_v53 }
 0x149   :  { %v816_v59 = vadd.f32 %v2364_v57, %v773_v21  ;;  %v1640_v57 = vor.u32 %v1773_v47, %v1639_v23 }
 0x14a   :  { %1235 = vmatpush.bf16.msrb.mxu0 %v1636_v43 }
 0x14b   :  { %1278 = vmatpush.bf16.msrb.mxu1 %v1640_v57 }
 0x14c   :  { %v848_v29 = vpop.f32.mrf.mxu2 }
 0x14d   :  { %v849_v50 = vadd.f32 %v848_v29, %v806_v37  ;;  %v654_v37 = vadd.f32 %v2221_v46, %v2219_v45 }
 0x14f   :  { %v2453_v34 = vpack.c.bf16 %v849_v50, %v847_v32  ;;  %v697_v30 = vadd.f32 %v2387_v25, %v654_v37  ;;  %v659_v32 = vadd.f32 %v2248_v3, %v2246_v2 }
 0x151   :  { %1669 = vmatmul.msk.bf16.vlgmr.msra.gmra.mxu3 %vm991_vm1, %v2453_v34  ;;  %1676 = vmatmul.msk.bf16.vlgmr.msra.gmra.mxu0 %vm991_vm1, %v2453_v34  ;;  %v702_v51 = vadd.f32 %v2411_v55, %v659_v32 }
 0x152   :  { %1683 = vmatmul.msk.bf16.vlgmr.msra.gmra.mxu1 %vm991_vm1, %v2453_v34  ;;  %1690 = vmatmul.msk.bf16.vlgmr.msrb.gmra.mxu2 %vm991_vm1, %v2453_v34 }
 0x154   :  { %v851_v58 = vpop.f32.mrf.mxu2 }
 0x155   :  { %v852_v38 = vadd.f32 %v851_v58, %v2322_v12  ;;  %v1772_v12 = vld [vmem:[%s3024_s3 + $0x28] sm:$0xf0] }
 0x156   :  { %v1632_v16 = vor.u32 %v1772_v12, %v1631_v7 }
 0x158   :  { %1192 = vmatpush.bf16.msrb.mxu3 %v1632_v16 }
 0x15c   :  { %v853_v6 = vpop.f32.mrf.mxu2 }
 0x15d   :  { %v854_v41 = vadd.f32 %v853_v6, %v811_v1 }
 0x15f   :  { %v2471_v48 = vpack.c.bf16 %v854_v41, %v852_v38 }
 0x161   :  { %1670 = vmatmul.msk.bf16.gmra.mxu3 %vm991_vm1, %v2471_v48  ;;  %1677 = vmatmul.msk.bf16.gmra.mxu0 %vm991_vm1, %v2471_v48 }
 0x162   :  { %1684 = vmatmul.msk.bf16.gmra.mxu1 %vm991_vm1, %v2471_v48  ;;  %1691 = vmatmul.msk.bf16.gmra.mxu2 %vm991_vm1, %v2471_v48 }
 0x164   :  { %v856_v17 = vpop.f32.mrf.mxu2 }
 0x165   :  { %v857_v61 = vadd.f32 %v856_v17, %v2358_v44  ;;  %v692_v44 = vadd.f32 %v2372_v0, %v649_v28 }
 0x167   :  { %v735_v14 = vadd.f32 %v2374_v4, %v692_v44 }
 0x169   :  { %v778_v0 = vadd.f32 %v2380_v15, %v735_v14 }
 0x16b   :  { %v821_v20 = vadd.f32 %v2382_v22, %v778_v0 }
 0x16c   :  { %v858_v31 = vpop.f32.mrf.mxu2 }
 0x16d   :  { %v859_v5 = vadd.f32 %v858_v31, %v816_v59 }
 0x16f   :  { %v2495_v39 = vpack.c.bf16 %v859_v5, %v857_v61 }
 0x171   :  { %1671 = vmatmul.msk.bf16.gmra.mxu3 %vm991_vm1, %v2495_v39  ;;  %1678 = vmatmul.msk.bf16.gmra.mxu0 %vm991_vm1, %v2495_v39 }
 0x172   :  { %1685 = vmatmul.msk.bf16.gmra.mxu1 %vm991_vm1, %v2495_v39  ;;  %1692 = vmatmul.msk.bf16.gmra.mxu2 %vm991_vm1, %v2495_v39 }
 0x174   :  { %v861_v13 = vpop.f32.mrf.mxu2 }
 0x175   :  { %v862_v26 = vadd.f32 %v861_v13, %v2376_v9  ;;  %v740_v9 = vadd.f32 %v2389_v10, %v697_v30 }
 0x177   :  { %v783_v45 = vadd.f32 %v2401_v42, %v740_v9 }
 0x179   :  { %v826_v46 = vadd.f32 %v2403_v52, %v783_v45 }
 0x17c   :  { %v863_v24 = vpop.f32.mrf.mxu2 }
 0x17d   :  { %v864_v35 = vadd.f32 %v863_v24, %v821_v20 }
 0x17f   :  { %v2524_v29 = vpack.c.bf16 %v864_v35, %v862_v26 }
 0x181   :  { %1672 = vmatmul.msk.bf16.gmra.mxu3 %vm991_vm1, %v2524_v29  ;;  %1679 = vmatmul.msk.bf16.gmra.mxu0 %vm991_vm1, %v2524_v29 }
 0x182   :  { %1686 = vmatmul.msk.bf16.gmra.mxu1 %vm991_vm1, %v2524_v29  ;;  %1693 = vmatmul.msk.bf16.gmra.mxu2 %vm991_vm1, %v2524_v29 }
 0x184   :  { %v866_v4 = vpop.f32.mrf.mxu2 }
 0x185   :  { %v867_v22 = vadd.f32 %v866_v4, %v2391_v33  ;;  %v745_v33 = vadd.f32 %v2413_v62, %v702_v51 }
 0x187   :  { %v788_v2 = vadd.f32 %v2433_v36, %v745_v33 }
 0x189   :  { %v831_v3 = vadd.f32 %v2438_v40, %v788_v2 }
 0x18c   :  { %v868_v15 = vpop.f32.mrf.mxu2 }
 0x18d   :  { %v869_v25 = vadd.f32 %v868_v15, %v826_v46 }
 0x18f   :  { %v2541_v50 = vpack.c.bf16 %v869_v25, %v867_v22 }
 0x191   :  { %1673 = vmatmul.msk.bf16.gmra.mxu3 %vm991_vm1, %v2541_v50  ;;  %1680 = vmatmul.msk.bf16.gmra.mxu0 %vm991_vm1, %v2541_v50 }
 0x192   :  { %1687 = vmatmul.msk.bf16.gmra.mxu1 %vm991_vm1, %v2541_v50  ;;  %1694 = vmatmul.msk.bf16.gmra.mxu2 %vm991_vm1, %v2541_v50 }
 0x194   :  { %v871_v10 = vpop.f32.mrf.mxu2 }
 0x195   :  { %v872_v52 = vadd.f32 %v871_v10, %v2415_v54 }
 0x19c   :  { %v873_v42 = vpop.f32.mrf.mxu2 }
 0x19d   :  { %v874_v55 = vadd.f32 %v873_v42, %v831_v3 }
 0x19f   :  { %v2556_v58 = vpack.c.bf16 %v874_v55, %v872_v52 }
 0x1a1   :  { %1674 = vmatmul.msk.bf16.gmra.mxu3 %vm991_vm1, %v2556_v58  ;;  %1681 = vmatmul.msk.bf16.gmra.mxu0 %vm991_vm1, %v2556_v58 }
 0x1a2   :  { %1688 = vmatmul.msk.bf16.gmra.mxu1 %vm991_vm1, %v2556_v58  ;;  %1695 = vmatmul.msk.bf16.gmra.mxu2 %vm991_vm1, %v2556_v58 }
 0x1a4   :  { %v876_v62 = vpop.f32.mrf.mxu2 }
 0x1a5   :  { %v877_v36 = vadd.f32 %v876_v62, %v2444_v11  ;;  %v2586_v11 = vld [vmem:[%s3025_s4] sm:$0x7f] }
 0x1a6   :  { %v2589_v60 = vperm.slane %v2586_v11, 1  ;;  %v2592_v56 = vperm.slane %v2586_v11, 2  ;;  %v2612_v38 = vperm.slane %v2586_v11, 3 }
 0x1a7   :  { %v2567_v54 = vpack.c.bf16 %v877_v36, %v877_v36 }
 0x1ac   :  { %v878_v40 = vpop.f32.mrf.mxu2 }
 0x1b1   :  { %1675 = vmatmul.msk.bf16.gmra.mxu3 %vm991_vm1, %v2567_v54  ;;  %1682 = vmatmul.msk.bf16.gmra.mxu0 %vm991_vm1, %v2567_v54 }
 0x1b2   :  { %1689 = vmatmul.msk.bf16.gmra.mxu1 %vm991_vm1, %v2567_v54  ;;  %1696 = vmatmul.msk.bf16.gmra.mxu2 %vm991_vm1, %v2567_v54 }
 0x1c1   :  { %1697 = vmatmul.msk.bf16.vlgmr.msrb.gmra.mxu3 %vm991_vm1, %v2453_v34  ;;  %1704 = vmatmul.msk.bf16.vlgmr.msrb.gmra.mxu0 %vm991_vm1, %v2453_v34 }
 0x1c2   :  { %1711 = vmatmul.msk.bf16.vlgmr.msrb.gmra.mxu1 %vm991_vm1, %v2453_v34  ;;  %v2604_v34 = vperm.slane %v2586_v11, 0 }
 0x1ce   :  { %v1065_v63 = vpop.f32.mrf.mxu0 }
 0x1cf   :  { %v1066_v1 = vadd.f32 %v1065_v63, %v2589_v60  ;;  %v1108_v6 = vpop.f32.mrf.mxu1 }
 0x1d0   :  { %v1109_v18 = vadd.f32 %v1108_v6, %v2592_v56 }
 0x1d1   :  { %1315 = vst [vmem:[%s3026_s5 + $0x8] sm:$0xff] %v1066_v1  ;;  %1698 = vmatmul.msk.bf16.gmra.mxu3 %vm991_vm1, %v2471_v48  ;;  %1705 = vmatmul.msk.bf16.gmra.mxu0 %vm991_vm1, %v2471_v48 }
 0x1d2   :  { %1316 = vst [vmem:[%s3026_s5 + $0x10] sm:$0xff] %v1109_v18  ;;  %1712 = vmatmul.msk.bf16.gmra.mxu1 %vm991_vm1, %v2471_v48 }
 0x1d4   :  { %v1022_v41 = vpop.f32.mrf.mxu3 }
 0x1d5   :  { %v1023_v49 = vadd.f32 %v1022_v41, %v2604_v34  ;;  %v1151_v17 = vpop.f32.mrf.mxu2 }
 0x1d6   :  { %v1152_v19 = vadd.f32 %v1151_v17, %v2612_v38  ;;  %v1067_v7 = vpop.f32.mrf.mxu0 }
 0x1d7   :  { %1314 = vst [vmem:[%s3026_s5] sm:$0xff] %v1023_v49  ;;  %v1068_v12 = vadd.f32 %v1067_v7, %v2589_v60  ;;  %v1110_v16 = vpop.f32.mrf.mxu1 }
 0x1d8   :  { %1317 = vst [vmem:[%s3026_s5 + $0x18] sm:$0xff] %v1152_v19  ;;  %v1111_v48 = vadd.f32 %v1110_v16, %v2592_v56 }
 0x1d9   :  { %1322 = vst [vmem:[%s3026_s5 + $0x40] sm:$0xff] %v1068_v12 }
 0x1da   :  { %1323 = vst [vmem:[%s3026_s5 + $0x48] sm:$0xff] %v1111_v48 }
 0x1dc   :  { %v1024_v21 = vpop.f32.mrf.mxu3 }
 0x1dd   :  { %v1025_v27 = vadd.f32 %v1024_v21, %v2604_v34  ;;  %v1153_v59 = vpop.f32.mrf.mxu2 }
 0x1de   :  { %v1154_v31 = vadd.f32 %v1153_v59, %v2612_v38  ;;  %v1070_v28 = vpop.f32.mrf.mxu0 }
 0x1df   :  { %1321 = vst [vmem:[%s3026_s5 + $0x38] sm:$0xff] %v1025_v27  ;;  %v1071_v61 = vadd.f32 %v1070_v28, %v2589_v60  ;;  %v1113_v5 = vpop.f32.mrf.mxu1 }
 0x1e0   :  { %1324 = vst [vmem:[%s3026_s5 + $0x50] sm:$0xff] %v1154_v31  ;;  %v1114_v8 = vadd.f32 %v1113_v5, %v2592_v56 }
 0x1e1   :  { %1329 = vst [vmem:[%s3026_s5 + $0x78] sm:$0xff] %v1071_v61  ;;  %1699 = vmatmul.msk.bf16.gmra.mxu3 %vm991_vm1, %v2495_v39  ;;  %1706 = vmatmul.msk.bf16.gmra.mxu0 %vm991_vm1, %v2495_v39 }
 0x1e2   :  { %1330 = vst [vmem:[%s3026_s5 + $0x80] sm:$0xff] %v1114_v8  ;;  %1713 = vmatmul.msk.bf16.gmra.mxu1 %vm991_vm1, %v2495_v39 }
 0x1e4   :  { %v1027_v53 = vpop.f32.mrf.mxu3 }
 0x1e5   :  { %v1028_v23 = vadd.f32 %v1027_v53, %v2604_v34  ;;  %v1156_v43 = vpop.f32.mrf.mxu2 }
 0x1e6   :  { %v1157_v47 = vadd.f32 %v1156_v43, %v2612_v38  ;;  %v1072_v44 = vpop.f32.mrf.mxu0 }
 0x1e7   :  { %1328 = vst [vmem:[%s3026_s5 + $0x70] sm:$0xff] %v1028_v23  ;;  %v1073_v57 = vadd.f32 %v1072_v44, %v2589_v60  ;;  %v1115_v13 = vpop.f32.mrf.mxu1 }
 0x1e8   :  { %1331 = vst [vmem:[%s3026_s5 + $0x88] sm:$0xff] %v1157_v47  ;;  %v1116_v39 = vadd.f32 %v1115_v13, %v2592_v56 }
 0x1e9   :  { %1336 = vst [vmem:[%s3026_s5 + $0xb0] sm:$0xff] %v1073_v57 }
 0x1ea   :  { %1337 = vst [vmem:[%s3026_s5 + $0xb8] sm:$0xff] %v1116_v39 }
 0x1ec   :  { %v1029_v14 = vpop.f32.mrf.mxu3 }
 0x1ed   :  { %v1030_v0 = vadd.f32 %v1029_v14, %v2604_v34  ;;  %v1158_v20 = vpop.f32.mrf.mxu2 }
 0x1ee   :  { %v1159_v24 = vadd.f32 %v1158_v20, %v2612_v38  ;;  %v1075_v26 = vpop.f32.mrf.mxu0 }
 0x1ef   :  { %1335 = vst [vmem:[%s3026_s5 + $0xa8] sm:$0xff] %v1030_v0  ;;  %v1076_v35 = vadd.f32 %v1075_v26, %v2589_v60  ;;  %v1118_v37 = vpop.f32.mrf.mxu1 }
 0x1f0   :  { %1338 = vst [vmem:[%s3026_s5 + $0xc0] sm:$0xff] %v1159_v24  ;;  %v1119_v30 = vadd.f32 %v1118_v37, %v2592_v56 }
 0x1f1   :  { %1343 = vst [vmem:[%s3026_s5 + $0xe8] sm:$0xff] %v1076_v35  ;;  %1700 = vmatmul.msk.bf16.gmra.mxu3 %vm991_vm1, %v2524_v29  ;;  %1707 = vmatmul.msk.bf16.gmra.mxu0 %vm991_vm1, %v2524_v29 }
 0x1f2   :  { %1344 = vst [vmem:[%s3026_s5 + $0xf0] sm:$0xff] %v1119_v30  ;;  %1714 = vmatmul.msk.bf16.gmra.mxu1 %vm991_vm1, %v2524_v29 }
 0x1f4   :  { %v1032_v4 = vpop.f32.mrf.mxu3 }
 0x1f5   :  { %v1033_v9 = vadd.f32 %v1032_v4, %v2604_v34  ;;  %v1161_v45 = vpop.f32.mrf.mxu2 }
 0x1f6   :  { %v1162_v46 = vadd.f32 %v1161_v45, %v2612_v38  ;;  %v1077_v15 = vpop.f32.mrf.mxu0 }
 0x1f7   :  { %1342 = vst [vmem:[%s3026_s5 + $0xe0] sm:$0xff] %v1033_v9  ;;  %v1078_v22 = vadd.f32 %v1077_v15, %v2589_v60  ;;  %v1120_v25 = vpop.f32.mrf.mxu1 }
 0x1f8   :  { %1345 = vst [vmem:[%s3026_s5 + $0xf8] sm:$0xff] %v1162_v46  ;;  %v1121_v29 = vadd.f32 %v1120_v25, %v2592_v56 }
 0x1f9   :  { %1350 = vst [vmem:[%s3026_s5 + $0x120] sm:$0xff] %v1078_v22 }
 0x1fa   :  { %1351 = vst [vmem:[%s3026_s5 + $0x128] sm:$0xff] %v1121_v29 }
 0x1fc   :  { %v1034_v32 = vpop.f32.mrf.mxu3 }
 0x1fd   :  { %v1035_v51 = vadd.f32 %v1034_v32, %v2604_v34  ;;  %v1163_v10 = vpop.f32.mrf.mxu2 }
 0x1fe   :  { %v1164_v33 = vadd.f32 %v1163_v10, %v2612_v38  ;;  %v1080_v2 = vpop.f32.mrf.mxu0 }
 0x1ff   :  { %1349 = vst [vmem:[%s3026_s5 + $0x118] sm:$0xff] %v1035_v51  ;;  %v1081_v3 = vadd.f32 %v1080_v2, %v2589_v60  ;;  %v1123_v42 = vpop.f32.mrf.mxu1  ;;  %v2845_v51 = vperm.slane %v2586_v11, 5 }
 0x200   :  { %1352 = vst [vmem:[%s3026_s5 + $0x130] sm:$0xff] %v1164_v33  ;;  %v1124_v52 = vadd.f32 %v1123_v42, %v2592_v56  ;;  %v2848_v33 = vperm.slane %v2586_v11, 6 }
 0x201   :  { %1357 = vst [vmem:[%s3026_s5 + $0x158] sm:$0xff] %v1081_v3  ;;  %1701 = vmatmul.msk.bf16.gmra.mxu3 %vm991_vm1, %v2541_v50  ;;  %1708 = vmatmul.msk.bf16.gmra.mxu0 %vm991_vm1, %v2541_v50 }
 0x202   :  { %1358 = vst [vmem:[%s3026_s5 + $0x160] sm:$0xff] %v1124_v52  ;;  %1715 = vmatmul.msk.bf16.gmra.mxu1 %vm991_vm1, %v2541_v50  ;;  %v2856_v52 = vperm.slane %v2586_v11, 4 }
 0x204   :  { %v1037_v55 = vpop.f32.mrf.mxu3 }
 0x205   :  { %v1038_v62 = vadd.f32 %v1037_v55, %v2604_v34  ;;  %v1166_v36 = vpop.f32.mrf.mxu2 }
 0x206   :  { %v1167_v40 = vadd.f32 %v1166_v36, %v2612_v38  ;;  %v1082_v63 = vpop.f32.mrf.mxu0 }
 0x207   :  { %1356 = vst [vmem:[%s3026_s5 + $0x150] sm:$0xff] %v1038_v62  ;;  %v1083_v1 = vadd.f32 %v1082_v63, %v2589_v60  ;;  %v1125_v6 = vpop.f32.mrf.mxu1 }
 0x208   :  { %1359 = vst [vmem:[%s3026_s5 + $0x168] sm:$0xff] %v1167_v40  ;;  %v1126_v50 = vadd.f32 %v1125_v6, %v2592_v56 }
 0x209   :  { %1364 = vst [vmem:[%s3026_s5 + $0x190] sm:$0xff] %v1083_v1 }
 0x20a   :  { %1365 = vst [vmem:[%s3026_s5 + $0x198] sm:$0xff] %v1126_v50 }
 0x20c   :  { %v1039_v18 = vpop.f32.mrf.mxu3 }
 0x20d   :  { %v1040_v41 = vadd.f32 %v1039_v18, %v2604_v34  ;;  %v1168_v49 = vpop.f32.mrf.mxu2 }
 0x20e   :  { %v1169_v17 = vadd.f32 %v1168_v49, %v2612_v38  ;;  %v1085_v19 = vpop.f32.mrf.mxu0 }
 0x20f   :  { %1363 = vst [vmem:[%s3026_s5 + $0x188] sm:$0xff] %v1040_v41  ;;  %v1086_v7 = vadd.f32 %v1085_v19, %v2589_v60  ;;  %v1128_v12 = vpop.f32.mrf.mxu1 }
 0x210   :  { %1366 = vst [vmem:[%s3026_s5 + $0x1a0] sm:$0xff] %v1169_v17  ;;  %v1129_v16 = vadd.f32 %v1128_v12, %v2592_v56 }
 0x211   :  { %1371 = vst [vmem:[%s3026_s5 + $0x1c8] sm:$0xff] %v1086_v7  ;;  %1702 = vmatmul.msk.bf16.gmra.mxu3 %vm991_vm1, %v2556_v58  ;;  %1709 = vmatmul.msk.bf16.gmra.mxu0 %vm991_vm1, %v2556_v58 }
 0x212   :  { %1372 = vst [vmem:[%s3026_s5 + $0x1d0] sm:$0xff] %v1129_v16  ;;  %1716 = vmatmul.msk.bf16.gmra.mxu1 %vm991_vm1, %v2556_v58 }
 0x214   :  { %v1042_v48 = vpop.f32.mrf.mxu3 }
 0x215   :  { %v1043_v21 = vadd.f32 %v1042_v48, %v2604_v34  ;;  %v1171_v27 = vpop.f32.mrf.mxu2 }
 0x216   :  { %v1172_v59 = vadd.f32 %v1171_v27, %v2612_v38  ;;  %v1087_v31 = vpop.f32.mrf.mxu0 }
 0x217   :  { %1370 = vst [vmem:[%s3026_s5 + $0x1c0] sm:$0xff] %v1043_v21  ;;  %v1088_v28 = vadd.f32 %v1087_v31, %v2589_v60  ;;  %v1130_v61 = vpop.f32.mrf.mxu1 }
 0x218   :  { %1373 = vst [vmem:[%s3026_s5 + $0x1d8] sm:$0xff] %v1172_v59  ;;  %v1131_v58 = vadd.f32 %v1130_v61, %v2592_v56 }
 0x219   :  { %1378 = vst [vmem:[%s3026_s5 + $0x200] sm:$0xff] %v1088_v28 }
 0x21a   :  { %1379 = vst [vmem:[%s3026_s5 + $0x208] sm:$0xff] %v1131_v58 }
 0x21c   :  { %v1044_v5 = vpop.f32.mrf.mxu3 }
 0x21d   :  { %v1045_v8 = vadd.f32 %v1044_v5, %v2604_v34  ;;  %v1173_v53 = vpop.f32.mrf.mxu2 }
 0x21e   :  { %v1174_v23 = vadd.f32 %v1173_v53, %v2612_v38  ;;  %v1090_v43 = vpop.f32.mrf.mxu0 }
 0x21f   :  { %1377 = vst [vmem:[%s3026_s5 + $0x1f8] sm:$0xff] %v1045_v8  ;;  %v1091_v47 = vadd.f32 %v1090_v43, %v2589_v60  ;;  %v1133_v44 = vpop.f32.mrf.mxu1 }
 0x220   :  { %1380 = vst [vmem:[%s3026_s5 + $0x210] sm:$0xff] %v1174_v23  ;;  %v1134_v57 = vadd.f32 %v1133_v44, %v2592_v56 }
 0x221   :  { %1385 = vst [vmem:[%s3026_s5 + $0x238] sm:$0xff] %v1091_v47  ;;  %1703 = vmatmul.msk.bf16.gmra.mxu3 %vm991_vm1, %v2567_v54  ;;  %1710 = vmatmul.msk.bf16.gmra.mxu0 %vm991_vm1, %v2567_v54 }
 0x222   :  { %1386 = vst [vmem:[%s3026_s5 + $0x240] sm:$0xff] %v1134_v57  ;;  %1717 = vmatmul.msk.bf16.gmra.mxu1 %vm991_vm1, %v2567_v54 }
 0x224   :  { %v1047_v13 = vpop.f32.mrf.mxu3 }
 0x225   :  { %v1048_v39 = vadd.f32 %v1047_v13, %v2604_v34  ;;  %v1176_v14 = vpop.f32.mrf.mxu2 }
 0x226   :  { %v1177_v0 = vadd.f32 %v1176_v14, %v2612_v38  ;;  %v1092_v20 = vpop.f32.mrf.mxu0 }
 0x227   :  { %1384 = vst [vmem:[%s3026_s5 + $0x230] sm:$0xff] %v1048_v39  ;;  %v1093_v24 = vadd.f32 %v1092_v20, %v2589_v60  ;;  %v1135_v26 = vpop.f32.mrf.mxu1 }
 0x228   :  { %1387 = vst [vmem:[%s3026_s5 + $0x248] sm:$0xff] %v1177_v0  ;;  %v1136_v54 = vadd.f32 %v1135_v26, %v2592_v56 }
 0x229   :  { %1392 = vst [vmem:[%s3026_s5 + $0x270] sm:$0xff] %v1093_v24 }
 0x22a   :  { %1393 = vst [vmem:[%s3026_s5 + $0x278] sm:$0xff] %v1136_v54 }
 0x22c   :  { %v1049_v35 = vpop.f32.mrf.mxu3 }
 0x22d   :  { %v1050_v37 = vadd.f32 %v1049_v35, %v2604_v34  ;;  %v1178_v30 = vpop.f32.mrf.mxu2 }
 0x22e   :  { %v1179_v4 = vadd.f32 %v1178_v30, %v2612_v38  ;;  %v1095_v9 = vpop.f32.mrf.mxu0 }
 0x22f   :  { %1391 = vst [vmem:[%s3026_s5 + $0x268] sm:$0xff] %v1050_v37  ;;  %v1096_v45 = vadd.f32 %v1095_v9, %v2589_v60  ;;  %v1138_v46 = vpop.f32.mrf.mxu1 }
 0x230   :  { %1394 = vst [vmem:[%s3026_s5 + $0x280] sm:$0xff] %v1179_v4  ;;  %v1139_v15 = vadd.f32 %v1138_v46, %v2592_v56 }
 0x231   :  { %1399 = vst [vmem:[%s3026_s5 + $0x2a8] sm:$0xf] %v1096_v45 }
 0x232   :  { %1400 = vst [vmem:[%s3026_s5 + $0x2b0] sm:$0xf] %v1139_v15 }
 0x234   :  { %v1052_v22 = vpop.f32.mrf.mxu3 }
 0x235   :  { %v1053_v25 = vadd.f32 %v1052_v22, %v2604_v34  ;;  %v1181_v29 = vpop.f32.mrf.mxu2 }
 0x236   :  { %v1182_v60 = vadd.f32 %v1181_v29, %v2612_v38  ;;  %v1097_v32 = vpop.f32.mrf.mxu0 }
 0x237   :  { %1398 = vst [vmem:[%s3026_s5 + $0x2a0] sm:$0xf] %v1053_v25  ;;  %v1140_v56 = vpop.f32.mrf.mxu1 }
 0x238   :  { %1401 = vst [vmem:[%s3026_s5 + $0x2b8] sm:$0xf] %v1182_v60 }
 0x23c   :  { %v1054_v10 = vpop.f32.mrf.mxu3 }
 0x23d   :  { %v1183_v34 = vpop.f32.mrf.mxu2 }
 0x23e   :  { %v1237_v2 = vpop.f32.mrf.mxu0 }
 0x23f   :  { %v1238_v38 = vadd.f32 %v1237_v2, %v2845_v51  ;;  %v1280_v3 = vpop.f32.mrf.mxu1 }
 0x240   :  { %v1281_v42 = vadd.f32 %v1280_v3, %v2848_v33 }
 0x241   :  { %1319 = vst [vmem:[%s3026_s5 + $0x28] sm:$0xff] %v1238_v38 }
 0x242   :  { %1320 = vst.msk [vmem:[%s3026_s5 + $0x30] sm:$0xff] %vm557_vm0, %v1281_v42 }
 0x244   :  { %v1194_v55 = vpop.f32.mrf.mxu3 }
 0x245   :  { %v1195_v62 = vadd.f32 %v1194_v55, %v2856_v52 }
 0x246   :  { %v1239_v36 = vpop.f32.mrf.mxu0 }
 0x247   :  { %1318 = vst [vmem:[%s3026_s5 + $0x20] sm:$0xff] %v1195_v62  ;;  %v1240_v40 = vadd.f32 %v1239_v36, %v2845_v51  ;;  %v1282_v63 = vpop.f32.mrf.mxu1 }
 0x248   :  { %v1283_v1 = vadd.f32 %v1282_v63, %v2848_v33 }
 0x249   :  { %1326 = vst [vmem:[%s3026_s5 + $0x60] sm:$0xff] %v1240_v40 }
 0x24a   :  { %1327 = vst.msk [vmem:[%s3026_s5 + $0x68] sm:$0xff] %vm557_vm0, %v1283_v1 }
 0x24c   :  { %v1196_v11 = vpop.f32.mrf.mxu3 }
 0x24d   :  { %v1197_v6 = vadd.f32 %v1196_v11, %v2856_v52 }
 0x24e   :  { %v1242_v50 = vpop.f32.mrf.mxu0 }
 0x24f   :  { %1325 = vst [vmem:[%s3026_s5 + $0x58] sm:$0xff] %v1197_v6  ;;  %v1243_v18 = vadd.f32 %v1242_v50, %v2845_v51  ;;  %v1285_v41 = vpop.f32.mrf.mxu1 }
 0x250   :  { %v1286_v49 = vadd.f32 %v1285_v41, %v2848_v33 }
 0x251   :  { %1333 = vst [vmem:[%s3026_s5 + $0x98] sm:$0xff] %v1243_v18 }
 0x252   :  { %1334 = vst.msk [vmem:[%s3026_s5 + $0xa0] sm:$0xff] %vm557_vm0, %v1286_v49 }
 0x254   :  { %v1199_v17 = vpop.f32.mrf.mxu3 }
 0x255   :  { %v1200_v19 = vadd.f32 %v1199_v17, %v2856_v52 }
 0x256   :  { %v1244_v7 = vpop.f32.mrf.mxu0 }
 0x257   :  { %1332 = vst [vmem:[%s3026_s5 + $0x90] sm:$0xff] %v1200_v19  ;;  %v1245_v12 = vadd.f32 %v1244_v7, %v2845_v51  ;;  %v1287_v16 = vpop.f32.mrf.mxu1 }
 0x258   :  { %v1288_v48 = vadd.f32 %v1287_v16, %v2848_v33 }
 0x259   :  { %1340 = vst [vmem:[%s3026_s5 + $0xd0] sm:$0xff] %v1245_v12 }
 0x25a   :  { %1341 = vst.msk [vmem:[%s3026_s5 + $0xd8] sm:$0xff] %vm557_vm0, %v1288_v48 }
 0x25c   :  { %v1201_v21 = vpop.f32.mrf.mxu3 }
 0x25d   :  { %v1202_v27 = vadd.f32 %v1201_v21, %v2856_v52 }
 0x25e   :  { %v1247_v59 = vpop.f32.mrf.mxu0 }
 0x25f   :  { %1339 = vst [vmem:[%s3026_s5 + $0xc8] sm:$0xff] %v1202_v27  ;;  %v1248_v31 = vadd.f32 %v1247_v59, %v2845_v51  ;;  %v1290_v28 = vpop.f32.mrf.mxu1 }
 0x260   :  { %v1291_v61 = vadd.f32 %v1290_v28, %v2848_v33 }
 0x261   :  { %1347 = vst [vmem:[%s3026_s5 + $0x108] sm:$0xff] %v1248_v31 }
 0x262   :  { %1348 = vst.msk [vmem:[%s3026_s5 + $0x110] sm:$0xff] %vm557_vm0, %v1291_v61 }
 0x264   :  { %v1204_v58 = vpop.f32.mrf.mxu3 }
 0x265   :  { %v1205_v5 = vadd.f32 %v1204_v58, %v2856_v52 }
 0x266   :  { %v1249_v8 = vpop.f32.mrf.mxu0 }
 0x267   :  { %1346 = vst [vmem:[%s3026_s5 + $0x100] sm:$0xff] %v1205_v5  ;;  %v1250_v53 = vadd.f32 %v1249_v8, %v2845_v51  ;;  %v1292_v23 = vpop.f32.mrf.mxu1 }
 0x268   :  { %v1293_v43 = vadd.f32 %v1292_v23, %v2848_v33 }
 0x269   :  { %1354 = vst [vmem:[%s3026_s5 + $0x140] sm:$0xff] %v1250_v53 }
 0x26a   :  { %1355 = vst.msk [vmem:[%s3026_s5 + $0x148] sm:$0xff] %vm557_vm0, %v1293_v43 }
 0x26c   :  { %v1206_v47 = vpop.f32.mrf.mxu3 }
 0x26d   :  { %v1207_v44 = vadd.f32 %v1206_v47, %v2856_v52 }
 0x26e   :  { %v1252_v57 = vpop.f32.mrf.mxu0 }
 0x26f   :  { %1353 = vst [vmem:[%s3026_s5 + $0x138] sm:$0xff] %v1207_v44  ;;  %v1253_v13 = vadd.f32 %v1252_v57, %v2845_v51  ;;  %v1295_v39 = vpop.f32.mrf.mxu1 }
 0x270   :  { %v1296_v14 = vadd.f32 %v1295_v39, %v2848_v33 }
 0x271   :  { %1361 = vst [vmem:[%s3026_s5 + $0x178] sm:$0xff] %v1253_v13 }
 0x272   :  { %1362 = vst.msk [vmem:[%s3026_s5 + $0x180] sm:$0xff] %vm557_vm0, %v1296_v14 }
 0x274   :  { %v1209_v0 = vpop.f32.mrf.mxu3 }
 0x275   :  { %v1210_v20 = vadd.f32 %v1209_v0, %v2856_v52 }
 0x276   :  { %v1254_v24 = vpop.f32.mrf.mxu0 }
 0x277   :  { %1360 = vst [vmem:[%s3026_s5 + $0x170] sm:$0xff] %v1210_v20  ;;  %v1255_v26 = vadd.f32 %v1254_v24, %v2845_v51  ;;  %v1297_v54 = vpop.f32.mrf.mxu1 }
 0x278   :  { %v1298_v35 = vadd.f32 %v1297_v54, %v2848_v33 }
 0x279   :  { %1368 = vst [vmem:[%s3026_s5 + $0x1b0] sm:$0xff] %v1255_v26 }
 0x27a   :  { %1369 = vst.msk [vmem:[%s3026_s5 + $0x1b8] sm:$0xff] %vm557_vm0, %v1298_v35 }
 0x27c   :  { %v1211_v37 = vpop.f32.mrf.mxu3 }
 0x27d   :  { %v1212_v30 = vadd.f32 %v1211_v37, %v2856_v52 }
 0x27e   :  { %v1257_v4 = vpop.f32.mrf.mxu0 }
 0x27f   :  { %1367 = vst [vmem:[%s3026_s5 + $0x1a8] sm:$0xff] %v1212_v30  ;;  %v1258_v9 = vadd.f32 %v1257_v4, %v2845_v51  ;;  %v1300_v45 = vpop.f32.mrf.mxu1 }
 0x280   :  { %v1301_v46 = vadd.f32 %v1300_v45, %v2848_v33 }
 0x281   :  { %1375 = vst [vmem:[%s3026_s5 + $0x1e8] sm:$0xff] %v1258_v9 }
 0x282   :  { %1376 = vst.msk [vmem:[%s3026_s5 + $0x1f0] sm:$0xff] %vm557_vm0, %v1301_v46 }
 0x284   :  { %v1214_v15 = vpop.f32.mrf.mxu3 }
 0x285   :  { %v1215_v22 = vadd.f32 %v1214_v15, %v2856_v52 }
 0x286   :  { %v1259_v25 = vpop.f32.mrf.mxu0 }
 0x287   :  { %1374 = vst [vmem:[%s3026_s5 + $0x1e0] sm:$0xff] %v1215_v22  ;;  %v1260_v29 = vadd.f32 %v1259_v25, %v2845_v51  ;;  %v1302_v60 = vpop.f32.mrf.mxu1 }
 0x288   :  { %v1303_v32 = vadd.f32 %v1302_v60, %v2848_v33 }
 0x289   :  { %1382 = vst [vmem:[%s3026_s5 + $0x220] sm:$0xff] %v1260_v29 }
 0x28a   :  { %1383 = vst.msk [vmem:[%s3026_s5 + $0x228] sm:$0xff] %vm557_vm0, %v1303_v32 }
 0x28c   :  { %v1216_v56 = vpop.f32.mrf.mxu3 }
 0x28d   :  { %v1217_v10 = vadd.f32 %v1216_v56, %v2856_v52 }
 0x28e   :  { %v1262_v34 = vpop.f32.mrf.mxu0 }
 0x28f   :  { %1381 = vst [vmem:[%s3026_s5 + $0x218] sm:$0xff] %v1217_v10  ;;  %v1263_v2 = vadd.f32 %v1262_v34, %v2845_v51  ;;  %v1305_v38 = vpop.f32.mrf.mxu1 }
 0x290   :  { %v1306_v3 = vadd.f32 %v1305_v38, %v2848_v33 }
 0x291   :  { %1389 = vst [vmem:[%s3026_s5 + $0x258] sm:$0xff] %v1263_v2 }
 0x292   :  { %1390 = vst.msk [vmem:[%s3026_s5 + $0x260] sm:$0xff] %vm557_vm0, %v1306_v3 }
 0x294   :  { %v1219_v42 = vpop.f32.mrf.mxu3 }
 0x295   :  { %v1220_v55 = vadd.f32 %v1219_v42, %v2856_v52 }
 0x296   :  { %v1264_v62 = vpop.f32.mrf.mxu0 }
 0x297   :  { %1388 = vst [vmem:[%s3026_s5 + $0x250] sm:$0xff] %v1220_v55  ;;  %v1265_v36 = vadd.f32 %v1264_v62, %v2845_v51  ;;  %v1307_v40 = vpop.f32.mrf.mxu1 }
 0x298   :  { %v1308_v63 = vadd.f32 %v1307_v40, %v2848_v33 }
 0x299   :  { %1396 = vst [vmem:[%s3026_s5 + $0x290] sm:$0xff] %v1265_v36 }
 0x29a   :  { %1397 = vst.msk [vmem:[%s3026_s5 + $0x298] sm:$0xff] %vm557_vm0, %v1308_v63 }
 0x29c   :  { %v1221_v1 = vpop.f32.mrf.mxu3 }
 0x29d   :  { %v1222_v11 = vadd.f32 %v1221_v1, %v2856_v52 }
 0x29e   :  { %v1267_v6 = vpop.f32.mrf.mxu0 }
 0x29f   :  { %1395 = vst [vmem:[%s3026_s5 + $0x288] sm:$0xff] %v1222_v11  ;;  %v1268_v50 = vadd.f32 %v1267_v6, %v2845_v51  ;;  %v1310_v18 = vpop.f32.mrf.mxu1 }
 0x2a0   :  { %v1311_v41 = vadd.f32 %v1310_v18, %v2848_v33 }
 0x2a1   :  { %1403 = vst [vmem:[%s3026_s5 + $0x2c8] sm:$0xf] %v1268_v50 }
 0x2a2   :  { %1405 = vst.msk [vmem:[%s3026_s5 + $0x2d0] sm:$0xf] %vm1404_vm2, %v1311_v41 }
 0x2a4   :  { %v1224_v49 = vpop.f32.mrf.mxu3 }
 0x2a5   :  { %v1225_v17 = vadd.f32 %v1224_v49, %v2856_v52 }
 0x2a6   :  { %v1269_v19 = vpop.f32.mrf.mxu0 }
 0x2a7   :  { %1402 = vst [vmem:[%s3026_s5 + $0x2c0] sm:$0xf] %v1225_v17  ;;  %v1312_v51 = vpop.f32.mrf.mxu1 }
 0x2ac   :  { %v1226_v7 = vpop.f32.mrf.mxu3 }

</bundles_post_ra>
